<compile_context>
chip_gen: v5e
topology: v5e:2x2
jax: 0.10.0
libtpu: 0.0.40
codegen_flags: <defaults>
</compile_context>

<pallas_src>
import functools

import jax
import jax.numpy as jnp
from jax import lax
from jax.experimental import pallas as pl
from jax.experimental.pallas import tpu as pltpu


def _pick_row_tile(n):
    """Largest row-tile from a fixed menu that divides n (n is a multiple of 8)."""
    for c in (512, 256, 128, 64, 32, 16, 8):
        if n % c == 0:
            return c
    return n


def _pick_time_chunk(t, cap=64):
    """Largest chunk <= cap that divides t (so no ragged tail in the serial pass)."""
    for c in range(min(t, cap), 0, -1):
        if t % c == 0:
            return c
    return 1


# --------------------------------------------------------------------------
# Pass A (parallel): gi = relu(emb) @ W_ih + b_ih over all T*B rows.
# --------------------------------------------------------------------------
def _input_proj_kernel(x_ref, w_ref, b_ref, gi_ref):
    gi_ref[...] = (
        jnp.dot(x_ref[...], w_ref[...], preferred_element_type=jnp.float32)
        + b_ref[...])


# --------------------------------------------------------------------------
# Pass B (serial): GRU recurrence.  gi is precomputed; only h @ W_hh remains.
# --------------------------------------------------------------------------
def _gru_recurrence_kernel(hidden_size, compute_dtype,
                           gi_ref,     # (Tc, B, 3H) f32, precomputed input gates
                           whh_ref,    # (H, 3H)     resident, compute_dtype
                           bhh_ref,    # (1, 3H)     f32
                           h0_ref,     # (B, H)      f32
                           hseq_ref,   # out: (Tc, B, H) compute_dtype
                           hlast_ref): # out: (B, H) f32 -- carries the hidden state
    H = hidden_size
    Tc = gi_ref.shape[0]

    @pl.when(pl.program_id(0) == 0)
    def _():
        hlast_ref[...] = h0_ref[...]

    def step(i, h):
        gi = gi_ref[i]                                             # (B, 3H) f32
        gh = (jnp.dot(h.astype(compute_dtype), whh_ref[...],
                      preferred_element_type=jnp.float32)
              + bhh_ref[...])                                      # (B, 3H) f32
        r = jax.nn.sigmoid(gi[:, 0:H] + gh[:, 0:H])
        z = jax.nn.sigmoid(gi[:, H:2 * H] + gh[:, H:2 * H])
        n = jnp.tanh(gi[:, 2 * H:3 * H] + r * gh[:, 2 * H:3 * H])
        h_new = (1.0 - z) * n + z * h                              # f32
        hseq_ref[i] = h_new.astype(hseq_ref.dtype)
        return h_new

    h_final = lax.fori_loop(0, Tc, step, hlast_ref[...], unroll=(Tc <= 16))
    hlast_ref[...] = h_final


# --------------------------------------------------------------------------
# Pass C (parallel): vocab projection + log-softmax over all T*B rows.
# Padded vocab lanes carry bias -1e30 (set in the wrapper) -> exp underflows
# to 0, so no in-kernel mask is needed and the numerics over the real vocab
# are exact.
# --------------------------------------------------------------------------
def _vocab_proj_kernel(h_ref, w_ref, b_ref, logp_ref):
    logits = (jnp.dot(h_ref[...], w_ref[...], preferred_element_type=jnp.float32)
              + b_ref[...])                                        # (RT, O_pad) f32
    m = jnp.max(logits, axis=-1, keepdims=True)
    lse = jnp.log(jnp.sum(jnp.exp(logits - m), axis=-1, keepdims=True))
    logp_ref[...] = logits - m - lse


def decoder_rnn_decode(tokens, emb_table, hidden0, w_ih, w_hh, b_ih, b_hh,
                       w_out, b_out, *, compute_dtype=jnp.float32):
    """Fused T-step DecoderRNN decode (teacher-forced token sequence).

    tokens:    int32 (T, B)
    emb_table: f32 (O, H)
    hidden0:   f32 (1, B, H)
    w_ih,w_hh: f32 (3, H, H)   gate order (r, z, n), x @ W layout
    b_ih,b_hh: f32 (3, H)
    w_out:     f32 (H, O),  b_out: f32 (O,)
    compute_dtype: dtype of MXU operands (f32 exact, bf16 for v6e/v7x MXU).
    returns (log_probs (T, B, O) f32, hidden (1, B, H) f32)
    """
    T, B = tokens.shape
    O, H = emb_table.shape
    assert B % 8 == 0, "batch must be a multiple of 8 (sublane width)"
    O_pad = ((O + 127) // 128) * 128
    TB = T * B
    RT = _pick_row_tile(TB)            # row tile for the parallel matmul passes
    Tc = _pick_time_chunk(T)           # time chunk for the serial recurrence

    resident = pl.Buffered(1)          # constant-index blocks: no double buffer

    # Pack the 3 GRU gates along the lane axis: (H, 3H); MXU operands in compute_dtype.
    wih_p = jnp.concatenate([w_ih[0], w_ih[1], w_ih[2]], axis=1).astype(compute_dtype)
    whh_p = jnp.concatenate([w_hh[0], w_hh[1], w_hh[2]], axis=1).astype(compute_dtype)
    bih_p = b_ih.reshape(1, 3 * H).astype(jnp.float32)
    bhh_p = b_hh.reshape(1, 3 * H).astype(jnp.float32)

    # Lane-dense vocab projection: zero-padded weight columns, bias padded with a
    # finite -1e30 so padded logits vanish under exp (no in-kernel mask).
    # TODO(synk): for realistic vocab sizes (~32k) tile O_pad with an extra grid
    # axis (block (H, 2048-4096)) or keep w_out in HBM with a manual pipeline and
    # set vmem_limit_bytes explicitly; at this toy O_pad the resident block is tiny.
    wout_p = (jnp.zeros((H, O_pad), jnp.float32).at[:, :O].set(w_out)
              .astype(compute_dtype))
    bout_p = jnp.full((1, O_pad), -1e30, jnp.float32).at[:, :O].set(b_out.reshape(1, O))

    # ReLU once on the table (commutes with the gather), then one batched gather.
    # TODO(synk): an in-kernel gather (scalar-prefetched token ids + resident table)
    # would fuse this too; kept as a wrapper jnp.take for robustness.
    embs = jnp.take(jnp.maximum(emb_table, 0.0), tokens.reshape(-1), axis=0)
    embs = embs.astype(compute_dtype)                        # (T*B, H)
    h0 = hidden0.reshape(B, H).astype(jnp.float32)

    # ---------------- Pass A: batched input projection (parallel grid) ----
    gi = pl.pallas_call(
        _input_proj_kernel,
        grid_spec=pltpu.PrefetchScalarGridSpec(
            num_scalar_prefetch=0,
            grid=(TB // RT,),
            in_specs=[
                pl.BlockSpec((RT, H), lambda r: (r, 0)),
                pl.BlockSpec((H, 3 * H), lambda r: (0, 0), pipeline_mode=resident),
                pl.BlockSpec((1, 3 * H), lambda r: (0, 0), pipeline_mode=resident),
            ],
            out_specs=pl.BlockSpec((RT, 3 * H), lambda r: (r, 0)),
        ),
        out_shape=jax.ShapeDtypeStruct((TB, 3 * H), jnp.float32),
        compiler_params=pltpu.CompilerParams(dimension_semantics=("parallel",)),
    )(embs, wih_p, bih_p)
    gi = gi.reshape(T, B, 3 * H)

    # ---------------- Pass B: serial GRU recurrence (chunked fori_loop) ----
    # TODO(synk): on v7x (2 TCs) the recurrence could additionally split batch
    # halves across cores via a leading parallel axis when B >= 16.
    hseq, h_last = pl.pallas_call(
        functools.partial(_gru_recurrence_kernel, H, compute_dtype),
        grid_spec=pltpu.PrefetchScalarGridSpec(
            num_scalar_prefetch=0,
            grid=(T // Tc,),
            in_specs=[
                pl.BlockSpec((Tc, B, 3 * H), lambda c: (c, 0, 0)),
                pl.BlockSpec((H, 3 * H), lambda c: (0, 0), pipeline_mode=resident),
                pl.BlockSpec((1, 3 * H), lambda c: (0, 0), pipeline_mode=resident),
                pl.BlockSpec((B, H), lambda c: (0, 0), pipeline_mode=resident),
            ],
            out_specs=[
                pl.BlockSpec((Tc, B, H), lambda c: (c, 0, 0)),
                pl.BlockSpec((B, H), lambda c: (0, 0)),   # carried hidden state
            ],
        ),
        out_shape=(jax.ShapeDtypeStruct((T, B, H), compute_dtype),
                   jax.ShapeDtypeStruct((B, H), jnp.float32)),
        compiler_params=pltpu.CompilerParams(dimension_semantics=("arbitrary",)),
    )(gi, whh_p, bhh_p, h0)

    # ---------------- Pass C: batched vocab projection + log-softmax -------
    # TODO(synk): on v5e, emitting log-probs in bf16 would halve the dominant
    # (T,B,O_pad) HBM write; kept f32 here for exactness.
    hflat = hseq.reshape(TB, H)
    logp_pad = pl.pallas_call(
        _vocab_proj_kernel,
        grid_spec=pltpu.PrefetchScalarGridSpec(
            num_scalar_prefetch=0,
            grid=(TB // RT,),
            in_specs=[
                pl.BlockSpec((RT, H), lambda r: (r, 0)),
                pl.BlockSpec((H, O_pad), lambda r: (0, 0), pipeline_mode=resident),
                pl.BlockSpec((1, O_pad), lambda r: (0, 0), pipeline_mode=resident),
            ],
            out_specs=pl.BlockSpec((RT, O_pad), lambda r: (r, 0)),
        ),
        out_shape=jax.ShapeDtypeStruct((TB, O_pad), jnp.float32),
        compiler_params=pltpu.CompilerParams(dimension_semantics=("parallel",)),
    )(hflat, wout_p, bout_p)

    logp = logp_pad.reshape(T, B, O_pad)[:, :, :O]
    return logp, h_last.reshape(1, B, H)


def reference_decode(tokens, emb_table, hidden0, w_ih, w_hh, b_ih, b_hh, w_out, b_out):
    """Pure-JAX reference: the PyTorch forward applied step-by-step in f32."""
    T, B = tokens.shape
    H = emb_table.shape[1]
    h = hidden0.reshape(B, H)
    outs = []
    for t in range(T):
        x = jnp.maximum(emb_table[tokens[t]], 0.0)             # relu(embedding)
        r = jax.nn.sigmoid(x @ w_ih[0] + b_ih[0] + h @ w_hh[0] + b_hh[0])
        z = jax.nn.sigmoid(x @ w_ih[1] + b_ih[1] + h @ w_hh[1] + b_hh[1])
        n = jnp.tanh(x @ w_ih[2] + b_ih[2] + r * (h @ w_hh[2] + b_hh[2]))
        h = (1.0 - z) * n + z * h
        logits = h @ w_out + b_out
        outs.append(jax.nn.log_softmax(logits, axis=-1))
    return jnp.stack(outs, axis=0), h.reshape(1, B, H)


if __name__ == "__main__":
    hidden_size = 256      # H (matches the PyTorch spec)
    output_size = 300      # vocabulary O (not a lane multiple -> exercises pad path)
    T, B = 6, 16           # decode steps x batched sequences (B multiple of 8)

    key = jax.random.PRNGKey(0)
    ks = jax.random.split(key, 8)
    k = 1.0 / jnp.sqrt(hidden_size)

    # Deterministic synthetic parameters (shapes follow nn.Embedding / nn.GRU / nn.Linear)
    emb_table = jax.random.normal(ks[0], (output_size, hidden_size), jnp.float32)
    w_ih = jax.random.uniform(ks[1], (3, hidden_size, hidden_size), jnp.float32, -k, k)
    w_hh = jax.random.uniform(ks[2], (3, hidden_size, hidden_size), jnp.float32, -k, k)
    b_ih = jax.random.uniform(ks[3], (3, hidden_size), jnp.float32, -k, k)
    b_hh = jax.random.uniform(ks[4], (3, hidden_size), jnp.float32, -k, k)
    w_out = jax.random.uniform(ks[5], (hidden_size, output_size), jnp.float32, -k, k)
    b_out = jax.random.uniform(ks[6], (output_size,), jnp.float32, -k, k)

    tokens = jax.random.randint(ks[7], (T, B), 0, output_size, jnp.int32)
    hidden0 = jnp.zeros((1, B, hidden_size), jnp.float32)      # initHidden() per sequence

    ref_logp, ref_h = reference_decode(tokens, emb_table, hidden0,
                                       w_ih, w_hh, b_ih, b_hh, w_out, b_out)

    # Exact f32 path.
    logp, h_last = decoder_rnn_decode(tokens, emb_table, hidden0,
                                      w_ih, w_hh, b_ih, b_hh, w_out, b_out,
                                      compute_dtype=jnp.float32)
    jax.block_until_ready((logp, h_last))
    assert logp.shape == (T, B, output_size)
    assert h_last.shape == (1, B, hidden_size)
    assert jnp.allclose(logp, ref_logp, atol=1e-4), float(jnp.abs(logp - ref_logp).max())
    assert jnp.allclose(h_last, ref_h, atol=1e-4), float(jnp.abs(h_last - ref_h).max())

    # bf16-MXU path (v6e/v7x): f32 accumulation + f32 nonlinearities; looser
    # tolerance against the f32 reference because the operands are rounded.
    logp_bf, h_bf = decoder_rnn_decode(tokens, emb_table, hidden0,
                                       w_ih, w_hh, b_ih, b_hh, w_out, b_out,
                                       compute_dtype=jnp.bfloat16)
    jax.block_until_ready((logp_bf, h_bf))
    assert jnp.allclose(logp_bf, ref_logp, atol=5e-2), float(jnp.abs(logp_bf - ref_logp).max())
    assert jnp.allclose(h_bf, ref_h, atol=5e-2), float(jnp.abs(h_bf - ref_h).max())

    print("KERNEL_OK")
</pallas_src>

<mosaic_0001>
module attributes {stable_mosaic.version = 11 : i64} {
  func.func @_input_proj_kernel(%arg0: i32, %arg1: memref<32x256xf32, #tpu.memory_space<vmem>>, %arg2: memref<256x768xf32, #tpu.memory_space<vmem>>, %arg3: memref<1x768xf32, #tpu.memory_space<vmem>>, %arg4: memref<32x768xf32, #tpu.memory_space<vmem>>) attributes {dimension_semantics = [#tpu.dimension_semantics<parallel>], iteration_bounds = array<i64: 3>, scalar_prefetch = 0 : i64, scratch_operands = 0 : i64, tpu.core_type = #tpu.core_type<tc>, window_params = [{transform_indices = @transform_0, window_bounds = array<i64: 32, 256>}, {pipeline_mode = #tpu.pipeline_mode<synchronous>, transform_indices = @transform_1, window_bounds = array<i64: 256, 768>}, {pipeline_mode = #tpu.pipeline_mode<synchronous>, transform_indices = @transform_2, window_bounds = array<i64: 1, 768>}, {transform_indices = @transform_3, window_bounds = array<i64: 32, 768>}]} {
    %c0 = arith.constant 0 : index
    %c0_0 = arith.constant 0 : index
    %0 = vector.load %arg1[%c0, %c0_0] : memref<32x256xf32, #tpu.memory_space<vmem>>, vector<32x256xf32>
    %c0_1 = arith.constant 0 : index
    %c0_2 = arith.constant 0 : index
    %1 = vector.load %arg2[%c0_1, %c0_2] : memref<256x768xf32, #tpu.memory_space<vmem>>, vector<256x768xf32>
    %cst = arith.constant dense<0.000000e+00> : vector<32x768xf32>
    %2 = tpu.matmul %0, %1, %cst {dimension_numbers = #tpu.dot_dimension_numbers<[1], [0], [0], [1], [0, 0, 1, 1], [], []>} : vector<32x256xf32>, vector<256x768xf32>, vector<32x768xf32> -> vector<32x768xf32>
    %c0_3 = arith.constant 0 : index
    %c0_4 = arith.constant 0 : index
    %3 = vector.load %arg3[%c0_3, %c0_4] : memref<1x768xf32, #tpu.memory_space<vmem>>, vector<1x768xf32>
    %4 = vector.broadcast %3 : vector<1x768xf32> to vector<32x768xf32>
    %5 = arith.addf %2, %4 : vector<32x768xf32>
    %c0_5 = arith.constant 0 : index
    %c0_6 = arith.constant 0 : index
    %6 = vector.load %arg4[%c0_5, %c0_6] : memref<32x768xf32, #tpu.memory_space<vmem>>, vector<32x768xf32>
    tpu.vector_store %arg4[%c0_5, %c0_6], %5 {strides = array<i32>} : memref<32x768xf32, #tpu.memory_space<vmem>>, vector<32x768xf32>,
    return
  }
  func.func @transform_0(%arg0: i32) -> (i32, i32) {
    %c0_i32 = arith.constant 0 : i32
    %c0_i32_0 = arith.constant 0 : i32
    return %arg0, %c0_i32 : i32, i32
  }
  func.func @transform_1(%arg0: i32) -> (i32, i32) {
    %c0_i32 = arith.constant 0 : i32
    %c0_i32_0 = arith.constant 0 : i32
    %c0_i32_1 = arith.constant 0 : i32
    return %c0_i32, %c0_i32_0 : i32, i32
  }
  func.func @transform_2(%arg0: i32) -> (i32, i32) {
    %c0_i32 = arith.constant 0 : i32
    %c0_i32_0 = arith.constant 0 : i32
    %c0_i32_1 = arith.constant 0 : i32
    return %c0_i32, %c0_i32_0 : i32, i32
  }
  func.func @transform_3(%arg0: i32) -> (i32, i32) {
    %c0_i32 = arith.constant 0 : i32
    %c0_i32_0 = arith.constant 0 : i32
    return %arg0, %c0_i32 : i32, i32
  }
}

</mosaic_0001>

<bundles_post_ra>
// kernel: tpu_custom_call.1
= control target key start
LH: loop header
LB: loop body
LE: loop exit
PB: predicated region body
PF: predicated region fallthrough
CT: control target
= control target key end

     0   :  { %8 = vsyncpa [#allocation3], 0  ;;  %s1454_s0 = inlined_call_operand.hbm [shape: f32[96,256], index: 0, kind: input, shape index: {}]   ;;  %s1455_s1 = inlined_call_operand.hbm [shape: f32[256,768], index: 1, kind: input, shape index: {}]   ;;  %s1456_s2 = inlined_call_operand.hbm [shape: f32[1,768], index: 2, kind: input, shape index: {}]   ;;  %s1457_s3 = inlined_call_operand.hbm [shape: f32[96,768], index: 3, kind: output, shape index: {}]  }
   0x1   :  { %10 = vsyncpa [#allocation3 + $0x1], 0 }
   0x2   :  { %11 = vsyncpa [#allocation6], 0 }
   0x3   :  { %12 = vsyncpa [#allocation4], 0 }
   0x4   :  { %14 = vsyncpa [#allocation4 + $0x1], 0  ;;  %s1205_s12 = smov 0   ;;  %s1207_s13 = smov 0  }
   0x5   :  { %s1209_s14 = smov 0   ;;  %s1211_s15 = smov 0  }
   0x6 LB: > { %s1226_s16 = sadd.s32 4294967295, %s1175_s15   ;;  %s920_s17 = sadd.s32 4294967294, %s1175_s15   ;;  %s1175_s15 = sphi %s1211_s15, %s1466_s15   ;;  %s1171_s14 = sphi %s1209_s14, %s1465_s14   ;;  %s1167_s13 = sphi %s1207_s13, %s1464_s13   ;;  %s1163_s12 = sphi %s1205_s12, %s1463_s12  }
   0x7   : > { %p40_p0 = scmp.ne.s32.totalorder %s1167_s13, %s1163_s12  ;;  %p41_p1 = scmp.eq.s32.totalorder %s1226_s16, 0 }
   0x8   : > { %p106_p2 = scmp.eq.s32.totalorder %s1226_s16, 2  ;;  %p112_p3 = scmp.eq.s32.totalorder %s920_s17, 2 }
   0x9   : > { %p1235_p4 = por %p41_p1, %p40_p0  ;;  %p921_p5 = scmp.ge.s32.totalorder %s1175_s15, 1 }
   0xa   : > { %p1240_p6 = por %p112_p3, %p40_p0  ;;  %p119_p7 = scmp.lt.s32.totalorder %s1175_s15, 4 }
   0xb   : > { %s130_s22 = sshll.u32 %s1455_s1, 4  ;;  %s1177_s24 = smov [#allocation5]   ;;  %s131_s22 = int_to_ptr.hbm [resolvable:$true] %s130_s22 }
   0xc   : > { %p1248_p8 = pnand %p921_p5, %p119_p7  ;;  %s132_s25 = sshll.u32 %s1177_s24, 4  ;;  %s133_s25 = int_to_ptr.vmem [resolvable:$true] %s132_s25 }
   0xd   : > { %s145_s28 = sshll.u32 %s1456_s2, 4  ;;  %s1178_s29 = smov 768   ;;  %s146_s28 = int_to_ptr.hbm [resolvable:$true] %s145_s28 }
   0xe   : > { %p954_p9 = pneg %p1248_p8  ;;  %s1179_s30 = smov 48  }
   0xf   : > { %s1180_s4 = smov [#allocation7]   ;;  %s1260_s6 = sadd.s32 1, %s1175_s15  }
  0x10   : > { %p955_p10 = pnand %p954_p9, %p41_p1  ;;  %s147_s5 = sshll.u32 %s1180_s4, 4  ;;  %s148_s5 = int_to_ptr.vmem [resolvable:$true] %s147_s5 }
  0x11   : > { %s27_s7 = sadd.s32 1, %s1171_s14  ;;  %s24_s8 = ssub.s32 %s1175_s15, %s1260_s6 }
  0x12   : > { %957 = dma.hbm_to_vmem [thread:$0]  (!%p955_p10), %s131_s22, 24576, %s133_s25, [#allocation6], %s1178_s29, %s1178_s29, %s1179_s30  }
  0x13   : > { %960 = dma.hbm_to_vmem [thread:$0]  (!%p955_p10), %s146_s28, 96, %s148_s5, [#allocation6]  }
  0x14   : > { %p34_p11 = scmp.ne.s32.totalorder %s1171_s14, %s1167_s13  ;;  %p25_p12 = scmp.eq.s32.totalorder %s24_s8, 0 }
  0x15   : > { %p35_p13 = scmp.eq.s32.totalorder %s1175_s15, 0  ;;  %p971_p3 = scmp.lt.s32.totalorder %s1175_s15, 3 }
  0x16   : > { %p1270_p0 = por %p106_p2, %p34_p11  ;;  %s158_s11 = sand.u32 1, %s1171_s14  }
  0x17   : > { %s1276_s10 = scalar_select %p25_p12, %s1171_s14, %s27_s7  }
  0x18   : > { %p36_p5 = por %p35_p13, %p34_p11  ;;  %s925_s17 = sshll.u32 %s158_s11, 6 }
  0x19   : > { %s939_s20 = sshll.u32 %s1175_s15, 6  ;;  %s162_s25 = scalar_lea.vmem [#allocation2], %s925_s17 }
  0x1a   : > { %s168_s24 = scalar_lea.hbm %s1454_s0, %s939_s20  ;;  %s171_s26 = sshll.u32 %s162_s25, 4  ;;  %s172_s26 = int_to_ptr.vmem [resolvable:$true] %s171_s26 }
  0x1b   : > { %s169_s27 = sshll.u32 %s168_s24, 4  ;;  %p1283_p2 = pnand %p971_p3, %p36_p5  ;;  %s170_s27 = int_to_ptr.hbm [resolvable:$true] %s169_s27 }
  0x1c   : > { %s159_s29 = scalar_lea.sflag [#allocation3], %s158_s11  ;;  %s1075_s30 = sshra.s32 %s170_s27, 4  ;;  %s1076_s30 = int_to_ptr.hbm [resolvable:$true] %s1075_s30 }
  0x1d   : > { %s1077_s4 = scalar_lea.hbm %s1076_s30, 64  ;;  %p1079_p9 = pneg %p1283_p2 }
  0x1e   : > { %p1078_p7 = scmp.ne.s32.totalorder %s1076_s30, %s1077_s4  ;;  %s1082_s8 = scalar_lea.hbm %s1454_s0, 192 }
  0x1f   : > { %p1083_p12 = scmp.lt.s32.totalorder %s1076_s30, %s1454_s0  ;;  %p1084_p13 = scmp.lt.s32.totalorder %s1082_s8, %s1077_s4 }
  0x20   : > { %p1080_p10 = pnand %p1079_p9, %p1078_p7 }
  0x21   : > { %p1085_p3 = por %p1084_p13, %p1083_p12 }
  0x22   : > { %p1081_p11 = pneg %p1080_p10 }
  0x24   : > { %p1086_p5 = pnand %p1085_p3, %p1081_p11 }
  0x26   : > { %1089 = shalt.err (!%p1086_p5)
}
  0x27   : > { %s1181_s11 = smov 256   ;;  %s1182_s21 = smov 16  }
  0x28   : > { %964 = dma.hbm_to_vmem [thread:$0]  (!%p1283_p2), %s170_s27, 1024, %s172_s26, %s159_s29, %s1181_s11, %s1181_s11, %s1182_s21  }
  0x29   : > { %183 = sbr.rel (%p1248_p8) target bundleno = 324 (0x144), region = 32  ;;  %s1300_s22 = sand.u32 (!%p1248_p8), 1, %s1167_s13  }
  0x2a   : > { %s930_s24 = sshll.u32 (!%p1248_p8), %s1300_s22, 6  ;;  %s186_s25 = scalar_lea.sflag (!%p1248_p8), [#allocation3], %s1300_s22 }
  0x2b   : > { %s1304_s30 = scalar_lea.vmem (!%p1248_p8), [#allocation2], %s930_s24 }
  0x2e   : > { %1150 = dma.done.wait (%p1235_p4), %s186_s25, 1024  }
  0x2f   : > { %1152 = vsyncadd (%p1235_p4), %s186_s25, 4294966272 }
  0x30   : > { %1154 = dma.done.wait (%p41_p1), [#allocation6], 24672  }
  0x31   : > { %1156 = vsyncadd (%p41_p1), [#allocation6], 4294942624  ;;  %v324_v0 = vld [vmem:[#allocation5 + $0x2d8] sm:$0xff]  ;;  %v318_v1 = vld [vmem:[#allocation5 + $0x2a8] sm:$0xff]  ;;  %s940_s18 = smul.u32 192, %s1300_s22  ;;  %s1125_s11 = scalar_lea.hbm %s1457_s3, 576 }
  0x32   : > { %v420_v2 = vld [vmem:[#allocation5 + $0x5d8] sm:$0xff]  ;;  %497 = vmatpush.msra.mxu2 %v324_v0  ;;  %v414_v3 = vld [vmem:[#allocation5 + $0x5a8] sm:$0xff]  ;;  %v323_v4 = vld [vmem:[#allocation5 + $0x2d0] sm:$0xff]  ;;  %s941_s26 = smul.u32 192, %s1226_s16  ;;  %s812_s16 = scalar_lea.sflag [#allocation4], %s1300_s22 }
  0x33   : > { %526 = vmatpush.msra.mxu3 %v420_v2  ;;  %v312_v5 = vld [vmem:[#allocation5 + $0x278] sm:$0xff]  ;;  %439 = vmatpush.msra.mxu0 %v323_v4  ;;  %v317_v7 = vld [vmem:[#allocation5 + $0x2a0] sm:$0xff]  ;;  %v306_v8 = vld [vmem:[#allocation5 + $0x248] sm:$0xff]  ;;  %s1391_s23 = scalar_lea.vmem [#allocation8], %s940_s18 }
  0x34   : > { %v408_v6 = vld [vmem:[#allocation5 + $0x578] sm:$0xff]  ;;  %498 = vmatpush.msra.mxu2 %v318_v1  ;;  %v419_v9 = vld [vmem:[#allocation5 + $0x5d0] sm:$0xff]  ;;  %v402_v10 = vld [vmem:[#allocation5 + $0x548] sm:$0xff]  ;;  %s824_s29 = scalar_lea.hbm %s1457_s3, %s941_s26  ;;  %s825_s4 = sshll.u32 %s1391_s23, 4  ;;  %s826_s4 = int_to_ptr.vmem [resolvable:$true] %s825_s4 }
  0x35   : > { %527 = vmatpush.msra.mxu3 %v414_v3  ;;  %440 = vmatpush.msra.mxu0 %v317_v7  ;;  %v311_v11 = vld [vmem:[#allocation5 + $0x270] sm:$0xff]  ;;  %v413_v12 = vld [vmem:[#allocation5 + $0x5a0] sm:$0xff]  ;;  %v300_v15 = vld [vmem:[#allocation5 + $0x218] sm:$0xff]  ;;  %s827_s5 = sshll.u32 %s824_s29, 4  ;;  %s828_s5 = int_to_ptr.hbm [resolvable:$true] %s827_s5 }
  0x36   : > { %468 = vmatpush.msra.mxu1 %v419_v9  ;;  %499 = vmatpush.msra.mxu2 %v312_v5  ;;  %v305_v13 = vld [vmem:[#allocation5 + $0x240] sm:$0xff]  ;;  %v407_v14 = vld [vmem:[#allocation5 + $0x570] sm:$0xff]  ;;  %v396_v16 = vld [vmem:[#allocation5 + $0x518] sm:$0xff]  ;;  %s1119_s7 = sshra.s32 %s828_s5, 4  ;;  %s1120_s7 = int_to_ptr.hbm [resolvable:$true] %s1119_s7 }
  0x37   : > { %528 = vmatpush.msra.mxu3 %v408_v6  ;;  %441 = vmatpush.msra.mxu0 %v311_v11  ;;  %v299_v17 = vld [vmem:[#allocation5 + $0x210] sm:$0xff]  ;;  %v401_v18 = vld [vmem:[#allocation5 + $0x540] sm:$0xff]  ;;  %v294_v19 = vld [vmem:[#allocation5 + $0x1e8] sm:$0xff]  ;;  %s1121_s8 = scalar_lea.hbm %s1120_s7, 192  ;;  %p1126_p2 = scmp.lt.s32.totalorder %s1120_s7, %s1457_s3 }
  0x38   : > { %469 = vmatpush.msra.mxu1 %v413_v12  ;;  %500 = vmatpush.msra.mxu2 %v306_v8  ;;  %v390_v20 = vld [vmem:[#allocation5 + $0x4e8] sm:$0xff]  ;;  %v293_v21 = vld [vmem:[#allocation5 + $0x1e0] sm:$0xff]  ;;  %v395_v22 = vld [vmem:[#allocation5 + $0x510] sm:$0xff]  ;;  %p1122_p1 = scmp.ne.s32.totalorder %s1120_s7, %s1121_s8  ;;  %p1127_p7 = scmp.lt.s32.totalorder %s1125_s11, %s1121_s8 }
  0x39   : > { %529 = vmatpush.msra.mxu3 %v402_v10  ;;  %442 = vmatpush.msra.mxu0 %v305_v13  ;;  %v288_v23 = vld [vmem:[#allocation5 + $0x1b8] sm:$0xff]  ;;  %v287_v25 = vld [vmem:[#allocation5 + $0x1b0] sm:$0xff]  ;;  %v389_v26 = vld [vmem:[#allocation5 + $0x4e0] sm:$0xff] }
  0x3a   : > { %470 = vmatpush.msra.mxu1 %v407_v14  ;;  %501 = vmatpush.msra.mxu2 %v300_v15  ;;  %v384_v24 = vld [vmem:[#allocation5 + $0x4b8] sm:$0xff]  ;;  %v282_v27 = vld [vmem:[#allocation5 + $0x188] sm:$0xff]  ;;  %v281_v29 = vld [vmem:[#allocation5 + $0x180] sm:$0xff]  ;;  %p1123_p4 = pnand %p1122_p1, %p1270_p0  ;;  %p1128_p9 = por %p1127_p7, %p1126_p2 }
  0x3b   : > { %530 = vmatpush.msra.mxu3 %v396_v16  ;;  %443 = vmatpush.msra.mxu0 %v299_v17  ;;  %v378_v28 = vld [vmem:[#allocation5 + $0x488] sm:$0xff]  ;;  %v383_v30 = vld [vmem:[#allocation5 + $0x4b0] sm:$0xff]  ;;  %v276_v31 = vld [vmem:[#allocation5 + $0x158] sm:$0xff] }
  0x3c   : > { %471 = vmatpush.msra.mxu1 %v401_v18  ;;  %502 = vmatpush.msra.mxu2 %v294_v19  ;;  %v372_v32 = vld [vmem:[#allocation5 + $0x458] sm:$0xff]  ;;  %v275_v33 = vld [vmem:[#allocation5 + $0x150] sm:$0xff]  ;;  %v377_v34 = vld [vmem:[#allocation5 + $0x480] sm:$0xff]  ;;  %p1124_p8 = pneg %p1123_p4 }
  0x3d   : > { %531 = vmatpush.msra.mxu3 %v390_v20  ;;  %444 = vmatpush.msra.mxu0 %v293_v21  ;;  %v270_v35 = vld [vmem:[#allocation5 + $0x128] sm:$0xff]  ;;  %v269_v37 = vld [vmem:[#allocation5 + $0x120] sm:$0xff]  ;;  %v371_v38 = vld [vmem:[#allocation5 + $0x450] sm:$0xff] }
  0x3e   : > { %472 = vmatpush.msra.mxu1 %v395_v22  ;;  %503 = vmatpush.msra.mxu2 %v288_v23  ;;  %v366_v36 = vld [vmem:[#allocation5 + $0x428] sm:$0xff]  ;;  %v264_v39 = vld [vmem:[#allocation5 + $0xf8] sm:$0xff]  ;;  %v263_v41 = vld [vmem:[#allocation5 + $0xf0] sm:$0xff]  ;;  %p1129_p10 = pnand %p1128_p9, %p1124_p8 }
  0x3f   : > { %532 = vmatpush.msra.mxu3 %v384_v24  ;;  %445 = vmatpush.msra.mxu0 %v287_v25  ;;  %v360_v40 = vld [vmem:[#allocation5 + $0x3f8] sm:$0xff]  ;;  %v365_v42 = vld [vmem:[#allocation5 + $0x420] sm:$0xff]  ;;  %v258_v43 = vld [vmem:[#allocation5 + $0xc8] sm:$0xff] }
  0x40   : > { %473 = vmatpush.msra.mxu1 %v389_v26  ;;  %504 = vmatpush.msra.mxu2 %v282_v27  ;;  %v354_v44 = vld [vmem:[#allocation5 + $0x3c8] sm:$0xff]  ;;  %v257_v45 = vld [vmem:[#allocation5 + $0xc0] sm:$0xff]  ;;  %v359_v46 = vld [vmem:[#allocation5 + $0x3f0] sm:$0xff] }
  0x41   : > { %533 = vmatpush.msra.mxu3 %v378_v28  ;;  %446 = vmatpush.msra.mxu0 %v281_v29  ;;  %v252_v47 = vld [vmem:[#allocation5 + $0x98] sm:$0xff]  ;;  %v251_v49 = vld [vmem:[#allocation5 + $0x90] sm:$0xff]  ;;  %v353_v50 = vld [vmem:[#allocation5 + $0x3c0] sm:$0xff] }
  0x42   : > { %474 = vmatpush.msra.mxu1 %v383_v30  ;;  %505 = vmatpush.msra.mxu2 %v276_v31  ;;  %v348_v48 = vld [vmem:[#allocation5 + $0x398] sm:$0xff]  ;;  %v246_v51 = vld [vmem:[#allocation5 + $0x68] sm:$0xff]  ;;  %v245_v53 = vld [vmem:[#allocation5 + $0x60] sm:$0xff] }
  0x43   : > { %534 = vmatpush.msra.mxu3 %v372_v32  ;;  %447 = vmatpush.msra.mxu0 %v275_v33  ;;  %v342_v52 = vld [vmem:[#allocation5 + $0x368] sm:$0xff]  ;;  %v347_v54 = vld [vmem:[#allocation5 + $0x390] sm:$0xff]  ;;  %v240_v55 = vld [vmem:[#allocation5 + $0x38] sm:$0xff] }
  0x44   : > { %475 = vmatpush.msra.mxu1 %v377_v34  ;;  %506 = vmatpush.msra.mxu2 %v270_v35  ;;  %v336_v56 = vld [vmem:[#allocation5 + $0x338] sm:$0xff]  ;;  %v239_v57 = vld [vmem:[#allocation5 + $0x30] sm:$0xff]  ;;  %v341_v58 = vld [vmem:[#allocation5 + $0x360] sm:$0xff] }
  0x45   : > { %535 = vmatpush.msra.mxu3 %v366_v36  ;;  %448 = vmatpush.msra.mxu0 %v269_v37  ;;  %v234_v59 = vld [vmem:[#allocation5 + $0x8] sm:$0xff]  ;;  %v1315_v61 = vld [vmem:[%s1304_s30] sm:$0xff]  ;;  %v335_v2 = vld [vmem:[#allocation5 + $0x330] sm:$0xff] }
  0x46   : > { %476 = vmatpush.msra.mxu1 %v371_v38  ;;  %507 = vmatpush.msra.mxu2 %v264_v39  ;;  %v330_v60 = vld [vmem:[#allocation5 + $0x308] sm:$0xff]  ;;  %v233_v1 = vld [vmem:[#allocation5] sm:$0xff]  ;;  %v320_v3 = vld [vmem:[#allocation5 + $0x2b8] sm:$0xff] }
  0x47   : > { %536 = vmatpush.msra.mxu3 %v360_v40  ;;  %449 = vmatpush.msra.mxu0 %v263_v41  ;;  %v1318_v62 = vld [vmem:[%s1304_s30 + $0x8] sm:$0xff]  ;;  %v416_v4 = vld [vmem:[#allocation5 + $0x5b8] sm:$0xff]  ;;  %v329_v5 = vld [vmem:[#allocation5 + $0x300] sm:$0xff] }
  0x48   : > { %477 = vmatpush.msra.mxu1 %v365_v42  ;;  %508 = vmatpush.msra.mxu2 %v258_v43  ;;  %v326_v63 = vld [vmem:[#allocation5 + $0x2e8] sm:$0xff]  ;;  %v325_v7 = vld [vmem:[#allocation5 + $0x2e0] sm:$0xff]  ;;  %v308_v9 = vld [vmem:[#allocation5 + $0x258] sm:$0xff] }
  0x49   : > { %537 = vmatpush.msra.mxu3 %v354_v44  ;;  %450 = vmatpush.msra.mxu0 %v257_v45  ;;  %v422_v0 = vld [vmem:[#allocation5 + $0x5e8] sm:$0xff]  ;;  %v319_v10 = vld [vmem:[#allocation5 + $0x2b0] sm:$0xff]  ;;  %v421_v12 = vld [vmem:[#allocation5 + $0x5e0] sm:$0xff] }
  0x4a   : > { %478 = vmatpush.msra.mxu1 %v359_v46  ;;  %509 = vmatpush.msra.mxu2 %v252_v47  ;;  %v314_v6 = vld [vmem:[#allocation5 + $0x288] sm:$0xff]  ;;  %v1324_v11 = vld [vmem:[%s1304_s30 + $0x10] sm:$0xff]  ;;  %v404_v14 = vld [vmem:[#allocation5 + $0x558] sm:$0xff] }
  0x4b   : > { %538 = vmatpush.msra.mxu3 %v348_v48  ;;  %451 = vmatpush.msra.mxu0 %v251_v49  ;;  %v410_v8 = vld [vmem:[#allocation5 + $0x588] sm:$0xff]  ;;  %v1328_v15 = vld [vmem:[%s1304_s30 + $0x18] sm:$0xff]  ;;  %v313_v16 = vld [vmem:[#allocation5 + $0x280] sm:$0xff] }
  0x4c   : > { %479 = vmatpush.msra.mxu1 %v353_v50  ;;  %510 = vmatpush.msra.mxu2 %v246_v51  ;;  %v302_v13 = vld [vmem:[#allocation5 + $0x228] sm:$0xff]  ;;  %v415_v17 = vld [vmem:[#allocation5 + $0x5b0] sm:$0xff]  ;;  %v296_v18 = vld [vmem:[#allocation5 + $0x1f8] sm:$0xff] }
  0x4d   : > { %539 = vmatpush.msra.mxu3 %v342_v52  ;;  %452 = vmatpush.msra.mxu0 %v245_v53  ;;  %v398_v19 = vld [vmem:[#allocation5 + $0x528] sm:$0xff]  ;;  %v307_v20 = vld [vmem:[#allocation5 + $0x250] sm:$0xff]  ;;  %v409_v21 = vld [vmem:[#allocation5 + $0x580] sm:$0xff] }
  0x4e   : > { %480 = vmatpush.msra.mxu1 %v347_v54  ;;  %511 = vmatpush.msra.mxu2 %v240_v55  ;;  %v290_v22 = vld [vmem:[#allocation5 + $0x1c8] sm:$0xff]  ;;  %v392_v23 = vld [vmem:[#allocation5 + $0x4f8] sm:$0xff]  ;;  %v301_v24 = vld [vmem:[#allocation5 + $0x220] sm:$0xff] }
  0x4f   : > { %540 = vmatpush.msra.mxu3 %v336_v56  ;;  %453 = vmatpush.msra.mxu0 %v239_v57  ;;  %v403_v25 = vld [vmem:[#allocation5 + $0x550] sm:$0xff]  ;;  %v284_v26 = vld [vmem:[#allocation5 + $0x198] sm:$0xff]  ;;  %v386_v27 = vld [vmem:[#allocation5 + $0x4c8] sm:$0xff] }
  0x50   : > { %481 = vmatpush.msra.mxu1 %v341_v58  ;;  %512 = vmatpush.msra.mxu2 %v234_v59  ;;  %v1334_v28 = vld [vmem:[%s1304_s30 + $0x20] sm:$0xff]  ;;  %v295_v29 = vld [vmem:[#allocation5 + $0x1f0] sm:$0xff]  ;;  %v278_v31 = vld [vmem:[#allocation5 + $0x168] sm:$0xff] }
  0x51   : > { %541 = vmatpush.msra.mxu3 %v330_v60  ;;  %513 = vmatmul.f32.vlgmr.msra.gmra.mxu2 %v1315_v61  ;;  %v397_v30 = vld [vmem:[#allocation5 + $0x520] sm:$0xff]  ;;  %v380_v32 = vld [vmem:[#allocation5 + $0x498] sm:$0xff]  ;;  %v1339_v33 = vld [vmem:[%s1304_s30 + $0x28] sm:$0xff] }
  0x52   : > { %542 = vmatmul.f32.vlgmr.msra.gmra.mxu3 %v1318_v62  ;;  %613 = vmatpush.msrb.mxu2 %v326_v63  ;;  %v289_v34 = vld [vmem:[#allocation5 + $0x1c0] sm:$0xff]  ;;  %v391_v35 = vld [vmem:[#allocation5 + $0x4f0] sm:$0xff]  ;;  %v272_v36 = vld [vmem:[#allocation5 + $0x138] sm:$0xff] }
  0x53   : > { %642 = vmatpush.msrb.mxu3 %v422_v0  ;;  %454 = vmatpush.msra.mxu0 %v233_v1  ;;  %v374_v37 = vld [vmem:[#allocation5 + $0x468] sm:$0xff]  ;;  %v283_v38 = vld [vmem:[#allocation5 + $0x190] sm:$0xff]  ;;  %v385_v39 = vld [vmem:[#allocation5 + $0x4c0] sm:$0xff] }
  0x54   : > { %482 = vmatpush.msra.mxu1 %v335_v2  ;;  %614 = vmatpush.msrb.mxu2 %v320_v3  ;;  %v266_v40 = vld [vmem:[#allocation5 + $0x108] sm:$0xff]  ;;  %v368_v41 = vld [vmem:[#allocation5 + $0x438] sm:$0xff]  ;;  %v277_v42 = vld [vmem:[#allocation5 + $0x160] sm:$0xff] }
  0x55   : > { %643 = vmatpush.msrb.mxu3 %v416_v4  ;;  %455 = vmatmul.f32.vlgmr.msra.gmra.mxu0 %v1315_v61  ;;  %v379_v43 = vld [vmem:[#allocation5 + $0x490] sm:$0xff]  ;;  %v260_v44 = vld [vmem:[#allocation5 + $0xd8] sm:$0xff]  ;;  %v362_v45 = vld [vmem:[#allocation5 + $0x408] sm:$0xff] }
  0x56   : > { %483 = vmatpush.msra.mxu1 %v329_v5  ;;  %615 = vmatpush.msrb.mxu2 %v314_v6  ;;  %v1344_v46 = vld [vmem:[%s1304_s30 + $0x30] sm:$0xff]  ;;  %v373_v48 = vld [vmem:[#allocation5 + $0x460] sm:$0xff]  ;;  %v254_v49 = vld [vmem:[#allocation5 + $0xa8] sm:$0xff] }
  0x57   : > { %555 = vmatpush.msrb.mxu0 %v325_v7  ;;  %644 = vmatpush.msrb.mxu3 %v410_v8  ;;  %v271_v47 = vld [vmem:[#allocation5 + $0x130] sm:$0xff]  ;;  %v356_v50 = vld [vmem:[#allocation5 + $0x3d8] sm:$0xff]  ;;  %v265_v52 = vld [vmem:[#allocation5 + $0x100] sm:$0xff] }
  0x58   : > { %484 = vmatmul.f32.vlgmr.msra.gmra.mxu1 %v1318_v62  ;;  %616 = vmatpush.msrb.mxu2 %v308_v9  ;;  %v1349_v51 = vld [vmem:[%s1304_s30 + $0x38] sm:$0xff]  ;;  %v367_v53 = vld [vmem:[#allocation5 + $0x430] sm:$0xff]  ;;  %v350_v55 = vld [vmem:[#allocation5 + $0x3a8] sm:$0xff] }
  0x59   : > { %556 = vmatpush.msrb.mxu0 %v319_v10  ;;  %516 = vmatmul.f32.gmra.mxu2 %v1324_v11  ;;  %v248_v54 = vld [vmem:[#allocation5 + $0x78] sm:$0xff]  ;;  %v259_v56 = vld [vmem:[#allocation5 + $0xd0] sm:$0xff]  ;;  %v361_v57 = vld [vmem:[#allocation5 + $0x400] sm:$0xff] }
  0x5a   : > { %584 = vmatpush.msrb.mxu1 %v421_v12  ;;  %617 = vmatpush.msrb.mxu2 %v302_v13  ;;  %v242_v58 = vld [vmem:[#allocation5 + $0x48] sm:$0xff]  ;;  %v344_v59 = vld [vmem:[#allocation5 + $0x378] sm:$0xff]  ;;  %v253_v60 = vld [vmem:[#allocation5 + $0xa0] sm:$0xff] }
  0x5b   : > { %645 = vmatpush.msrb.mxu3 %v404_v14  ;;  %557 = vmatpush.msrb.mxu0 %v313_v16  ;;  %v355_v63 = vld [vmem:[#allocation5 + $0x3d0] sm:$0xff]  ;;  %v236_v0 = vld [vmem:[#allocation5 + $0x18] sm:$0xff]  ;;  %v338_v1 = vld [vmem:[#allocation5 + $0x348] sm:$0xff] }
  0x5c   : > { %545 = vmatmul.f32.gmra.mxu3 %v1328_v15  ;;  %585 = vmatpush.msrb.mxu1 %v415_v17  ;;  %v247_v2 = vld [vmem:[#allocation5 + $0x70] sm:$0xff]  ;;  %v349_v3 = vld [vmem:[#allocation5 + $0x3a0] sm:$0xff]  ;;  %v332_v4 = vld [vmem:[#allocation5 + $0x318] sm:$0xff] }
  0x5d   : > { %618 = vmatpush.msrb.mxu2 %v296_v18  ;;  %646 = vmatpush.msrb.mxu3 %v398_v19  ;;  %v328_v5 = vld [vmem:[#allocation5 + $0x2f8] sm:$0xff]  ;;  %v241_v6 = vld [vmem:[#allocation5 + $0x40] sm:$0xff]  ;;  %v343_v7 = vld [vmem:[#allocation5 + $0x370] sm:$0xff] }
  0x5e   : > { %558 = vmatpush.msrb.mxu0 %v307_v20  ;;  %586 = vmatpush.msrb.mxu1 %v409_v21  ;;  %v322_v8 = vld [vmem:[#allocation5 + $0x2c8] sm:$0xff]  ;;  %v424_v9 = vld [vmem:[#allocation5 + $0x5f8] sm:$0xff]  ;;  %v235_v10 = vld [vmem:[#allocation5 + $0x10] sm:$0xff] }
  0x5f   : > { %619 = vmatpush.msrb.mxu2 %v290_v22  ;;  %647 = vmatpush.msrb.mxu3 %v392_v23  ;;  %v337_v12 = vld [vmem:[#allocation5 + $0x340] sm:$0xff]  ;;  %v316_v13 = vld [vmem:[#allocation5 + $0x298] sm:$0xff]  ;;  %v418_v14 = vld [vmem:[#allocation5 + $0x5c8] sm:$0xff] }
  0x60   : > { %458 = vmatmul.f32.gmra.mxu0 %v1324_v11  ;;  %587 = vmatpush.msrb.mxu1 %v403_v25  ;;  %v331_v16 = vld [vmem:[#allocation5 + $0x310] sm:$0xff]  ;;  %v310_v18 = vld [vmem:[#allocation5 + $0x268] sm:$0xff]  ;;  %v412_v19 = vld [vmem:[#allocation5 + $0x598] sm:$0xff] }
  0x61   : > { %559 = vmatpush.msrb.mxu0 %v301_v24  ;;  %620 = vmatpush.msrb.mxu2 %v284_v26  ;;  %v327_v17 = vld [vmem:[#allocation5 + $0x2f0] sm:$0xff]  ;;  %v321_v20 = vld [vmem:[#allocation5 + $0x2c0] sm:$0xff]  ;;  %v304_v22 = vld [vmem:[#allocation5 + $0x238] sm:$0xff] }
  0x62   : > { %648 = vmatpush.msrb.mxu3 %v386_v27  ;;  %487 = vmatmul.f32.gmra.mxu1 %v1328_v15  ;;  %v423_v21 = vld [vmem:[#allocation5 + $0x5f0] sm:$0xff]  ;;  %v406_v23 = vld [vmem:[#allocation5 + $0x568] sm:$0xff]  ;;  %v417_v25 = vld [vmem:[#allocation5 + $0x5c0] sm:$0xff] }
  0x63   : > { %519 = vmatmul.f32.gmra.mxu2 %v1334_v28  ;;  %560 = vmatpush.msrb.mxu0 %v295_v29  ;;  %v315_v24 = vld [vmem:[#allocation5 + $0x290] sm:$0xff]  ;;  %v298_v26 = vld [vmem:[#allocation5 + $0x208] sm:$0xff]  ;;  %v400_v27 = vld [vmem:[#allocation5 + $0x538] sm:$0xff] }
  0x64   : > { %588 = vmatpush.msrb.mxu1 %v397_v30  ;;  %621 = vmatpush.msrb.mxu2 %v278_v31  ;;  %v309_v29 = vld [vmem:[#allocation5 + $0x260] sm:$0xff]  ;;  %v411_v30 = vld [vmem:[#allocation5 + $0x590] sm:$0xff]  ;;  %v292_v31 = vld [vmem:[#allocation5 + $0x1d8] sm:$0xff] }
  0x65   : > { %649 = vmatpush.msrb.mxu3 %v380_v32  ;;  %561 = vmatpush.msrb.mxu0 %v289_v34  ;;  %v394_v32 = vld [vmem:[#allocation5 + $0x508] sm:$0xff]  ;;  %v303_v34 = vld [vmem:[#allocation5 + $0x230] sm:$0xff] }
  0x66   : > { %548 = vmatmul.f32.gmra.mxu3 %v1339_v33  ;;  %589 = vmatpush.msrb.mxu1 %v391_v35  ;;  %v405_v35 = vld [vmem:[#allocation5 + $0x560] sm:$0xff] }
  0x67   : > { %622 = vmatpush.msrb.mxu2 %v272_v36  ;;  %650 = vmatpush.msrb.mxu3 %v374_v37  ;;  %v286_v36 = vld [vmem:[#allocation5 + $0x1a8] sm:$0xff]  ;;  %v388_v37 = vld [vmem:[#allocation5 + $0x4d8] sm:$0xff] }
  0x68   : > { %562 = vmatpush.msrb.mxu0 %v283_v38  ;;  %590 = vmatpush.msrb.mxu1 %v385_v39  ;;  %v297_v38 = vld [vmem:[#allocation5 + $0x200] sm:$0xff]  ;;  %v399_v39 = vld [vmem:[#allocation5 + $0x530] sm:$0xff] }
  0x69   : > { %623 = vmatpush.msrb.mxu2 %v266_v40  ;;  %651 = vmatpush.msrb.mxu3 %v368_v41  ;;  %v280_v40 = vld [vmem:[#allocation5 + $0x178] sm:$0xff]  ;;  %v382_v41 = vld [vmem:[#allocation5 + $0x4a8] sm:$0xff] }
  0x6a   : > { %461 = vmatmul.f32.gmra.mxu0 %v1334_v28  ;;  %591 = vmatpush.msrb.mxu1 %v379_v43  ;;  %v393_v43 = vld [vmem:[#allocation5 + $0x500] sm:$0xff] }
  0x6b   : > { %563 = vmatpush.msrb.mxu0 %v277_v42  ;;  %624 = vmatpush.msrb.mxu2 %v260_v44  ;;  %v291_v42 = vld [vmem:[#allocation5 + $0x1d0] sm:$0xff]  ;;  %v274_v44 = vld [vmem:[#allocation5 + $0x148] sm:$0xff] }
  0x6c   : > { %652 = vmatpush.msrb.mxu3 %v362_v45  ;;  %490 = vmatmul.f32.gmra.mxu1 %v1339_v33  ;;  %v376_v45 = vld [vmem:[#allocation5 + $0x478] sm:$0xff] }
  0x6d   : > { %522 = vmatmul.f32.gmra.mxu2 %v1344_v46  ;;  %564 = vmatpush.msrb.mxu0 %v271_v47  ;;  %v285_v47 = vld [vmem:[#allocation5 + $0x1a0] sm:$0xff] }
  0x6e   : > { %592 = vmatpush.msrb.mxu1 %v373_v48  ;;  %625 = vmatpush.msrb.mxu2 %v254_v49  ;;  %v387_v48 = vld [vmem:[#allocation5 + $0x4d0] sm:$0xff]  ;;  %v268_v49 = vld [vmem:[#allocation5 + $0x118] sm:$0xff] }
  0x6f   : > { %653 = vmatpush.msrb.mxu3 %v356_v50  ;;  %565 = vmatpush.msrb.mxu0 %v265_v52  ;;  %v370_v50 = vld [vmem:[#allocation5 + $0x448] sm:$0xff]  ;;  %v279_v52 = vld [vmem:[#allocation5 + $0x170] sm:$0xff] }
  0x70   : > { %551 = vmatmul.f32.gmra.mxu3 %v1349_v51  ;;  %593 = vmatpush.msrb.mxu1 %v367_v53  ;;  %v381_v53 = vld [vmem:[#allocation5 + $0x4a0] sm:$0xff] }
  0x71   : > { %626 = vmatpush.msrb.mxu2 %v248_v54  ;;  %654 = vmatpush.msrb.mxu3 %v350_v55  ;;  %v262_v54 = vld [vmem:[#allocation5 + $0xe8] sm:$0xff]  ;;  %v364_v55 = vld [vmem:[#allocation5 + $0x418] sm:$0xff] }
  0x72   : > { %566 = vmatpush.msrb.mxu0 %v259_v56  ;;  %594 = vmatpush.msrb.mxu1 %v361_v57  ;;  %v273_v56 = vld [vmem:[#allocation5 + $0x140] sm:$0xff]  ;;  %v375_v57 = vld [vmem:[#allocation5 + $0x470] sm:$0xff] }
  0x73   : > { %627 = vmatpush.msrb.mxu2 %v242_v58  ;;  %655 = vmatpush.msrb.mxu3 %v344_v59  ;;  %v256_v58 = vld [vmem:[#allocation5 + $0xb8] sm:$0xff]  ;;  %v358_v59 = vld [vmem:[#allocation5 + $0x3e8] sm:$0xff] }
  0x74   : > { %464 = vmatmul.f32.gmra.mxu0 %v1344_v46  ;;  %595 = vmatpush.msrb.mxu1 %v355_v63  ;;  %v369_v63 = vld [vmem:[#allocation5 + $0x440] sm:$0xff] }
  0x75   : > { %567 = vmatpush.msrb.mxu0 %v253_v60  ;;  %628 = vmatpush.msrb.mxu2 %v236_v0  ;;  %v267_v60 = vld [vmem:[#allocation5 + $0x110] sm:$0xff]  ;;  %v250_v0 = vld [vmem:[#allocation5 + $0x88] sm:$0xff] }
  0x76   : > { %656 = vmatpush.msrb.mxu3 %v338_v1  ;;  %493 = vmatmul.f32.gmra.mxu1 %v1349_v51  ;;  %v352_v1 = vld [vmem:[#allocation5 + $0x3b8] sm:$0xff] }
  0x77   : > { %568 = vmatpush.msrb.mxu0 %v247_v2  ;;  %596 = vmatpush.msrb.mxu1 %v349_v3  ;;  %v261_v2 = vld [vmem:[#allocation5 + $0xe0] sm:$0xff]  ;;  %v363_v3 = vld [vmem:[#allocation5 + $0x410] sm:$0xff] }
  0x78   : > { %629 = vmatmul.f32.vlgmr.msrb.gmra.mxu2 %v1315_v61  ;;  %657 = vmatpush.msrb.mxu3 %v332_v4  ;;  %v244_v4 = vld [vmem:[#allocation5 + $0x58] sm:$0xff] }
  0x79   : > { %729 = vmatpush.msra.mxu2 %v328_v5  ;;  %569 = vmatpush.msrb.mxu0 %v241_v6  ;;  %v346_v5 = vld [vmem:[#allocation5 + $0x388] sm:$0xff]  ;;  %v255_v6 = vld [vmem:[#allocation5 + $0xb0] sm:$0xff] }
  0x7a   : > { %597 = vmatpush.msrb.mxu1 %v343_v7  ;;  %658 = vmatmul.f32.vlgmr.msrb.gmra.mxu3 %v1318_v62  ;;  %v357_v7 = vld [vmem:[#allocation5 + $0x3e0] sm:$0xff] }
  0x7b   : > { %730 = vmatpush.msra.mxu2 %v322_v8  ;;  %758 = vmatpush.msra.mxu3 %v424_v9  ;;  %v238_v8 = vld [vmem:[#allocation5 + $0x28] sm:$0xff]  ;;  %v340_v9 = vld [vmem:[#allocation5 + $0x358] sm:$0xff] }
  0x7c   : > { %570 = vmatpush.msrb.mxu0 %v235_v10  ;;  %598 = vmatpush.msrb.mxu1 %v337_v12  ;;  %v249_v10 = vld [vmem:[#allocation5 + $0x80] sm:$0xff]  ;;  %v351_v12 = vld [vmem:[#allocation5 + $0x3b0] sm:$0xff] }
  0x7d   : > { %731 = vmatpush.msra.mxu2 %v316_v13  ;;  %759 = vmatpush.msra.mxu3 %v418_v14  ;;  %v334_v13 = vld [vmem:[#allocation5 + $0x328] sm:$0xff]  ;;  %v243_v14 = vld [vmem:[#allocation5 + $0x50] sm:$0xff] }
  0x7e   : > { %571 = vmatmul.f32.vlgmr.msrb.gmra.mxu0 %v1315_v61  ;;  %599 = vmatpush.msrb.mxu1 %v331_v16  ;;  %v345_v16 = vld [vmem:[#allocation5 + $0x380] sm:$0xff] }
  0x7f   : > { %671 = vmatpush.msra.mxu0 %v327_v17  ;;  %732 = vmatpush.msra.mxu2 %v310_v18  ;;  %v237_v17 = vld [vmem:[#allocation5 + $0x20] sm:$0xff]  ;;  %v339_v18 = vld [vmem:[#allocation5 + $0x350] sm:$0xff] }
  0x80   : > { %760 = vmatpush.msra.mxu3 %v412_v19  ;;  %600 = vmatmul.f32.vlgmr.msrb.gmra.mxu1 %v1318_v62  ;;  %v333_v19 = vld [vmem:[#allocation5 + $0x320] sm:$0xff] }
  0x81   : > { %632 = vmatmul.f32.gmra.mxu2 %v1324_v11  ;;  %672 = vmatpush.msra.mxu0 %v321_v20 }
  0x82   : > { %700 = vmatpush.msra.mxu1 %v423_v21  ;;  %733 = vmatpush.msra.mxu2 %v304_v22 }
  0x83   : > { %761 = vmatpush.msra.mxu3 %v406_v23  ;;  %673 = vmatpush.msra.mxu0 %v315_v24 }
  0x84   : > { %661 = vmatmul.f32.gmra.mxu3 %v1328_v15  ;;  %701 = vmatpush.msra.mxu1 %v417_v25 }
  0x85   : > { %734 = vmatpush.msra.mxu2 %v298_v26  ;;  %762 = vmatpush.msra.mxu3 %v400_v27 }
  0x86   : > { %674 = vmatpush.msra.mxu0 %v309_v29  ;;  %702 = vmatpush.msra.mxu1 %v411_v30 }
  0x87   : > { %735 = vmatpush.msra.mxu2 %v292_v31  ;;  %763 = vmatpush.msra.mxu3 %v394_v32 }
  0x88   : > { %574 = vmatmul.f32.gmra.mxu0 %v1324_v11  ;;  %703 = vmatpush.msra.mxu1 %v405_v35 }
  0x89   : > { %675 = vmatpush.msra.mxu0 %v303_v34  ;;  %736 = vmatpush.msra.mxu2 %v286_v36 }
  0x8a   : > { %764 = vmatpush.msra.mxu3 %v388_v37  ;;  %603 = vmatmul.f32.gmra.mxu1 %v1328_v15 }
  0x8b   : > { %635 = vmatmul.f32.gmra.mxu2 %v1334_v28  ;;  %676 = vmatpush.msra.mxu0 %v297_v38 }
  0x8c   : > { %704 = vmatpush.msra.mxu1 %v399_v39  ;;  %737 = vmatpush.msra.mxu2 %v280_v40 }
  0x8d   : > { %765 = vmatpush.msra.mxu3 %v382_v41  ;;  %677 = vmatpush.msra.mxu0 %v291_v42 }
  0x8e   : > { %664 = vmatmul.f32.gmra.mxu3 %v1339_v33  ;;  %705 = vmatpush.msra.mxu1 %v393_v43 }
  0x8f   : > { %738 = vmatpush.msra.mxu2 %v274_v44  ;;  %766 = vmatpush.msra.mxu3 %v376_v45 }
  0x90   : > { %678 = vmatpush.msra.mxu0 %v285_v47  ;;  %706 = vmatpush.msra.mxu1 %v387_v48 }
  0x91   : > { %739 = vmatpush.msra.mxu2 %v268_v49  ;;  %767 = vmatpush.msra.mxu3 %v370_v50 }
  0x92   : > { %577 = vmatmul.f32.gmra.mxu0 %v1334_v28  ;;  %707 = vmatpush.msra.mxu1 %v381_v53 }
  0x93   : > { %679 = vmatpush.msra.mxu0 %v279_v52  ;;  %740 = vmatpush.msra.mxu2 %v262_v54 }
  0x94   : > { %768 = vmatpush.msra.mxu3 %v364_v55  ;;  %606 = vmatmul.f32.gmra.mxu1 %v1339_v33 }
  0x95   : > { %638 = vmatmul.f32.gmra.mxu2 %v1344_v46  ;;  %680 = vmatpush.msra.mxu0 %v273_v56 }
  0x96   : > { %708 = vmatpush.msra.mxu1 %v375_v57  ;;  %741 = vmatpush.msra.mxu2 %v256_v58 }
  0x97   : > { %769 = vmatpush.msra.mxu3 %v358_v59  ;;  %681 = vmatpush.msra.mxu0 %v267_v60 }
  0x98   : > { %667 = vmatmul.f32.gmra.mxu3 %v1349_v51  ;;  %709 = vmatpush.msra.mxu1 %v369_v63 }
  0x99   : > { %742 = vmatpush.msra.mxu2 %v250_v0  ;;  %770 = vmatpush.msra.mxu3 %v352_v1 }
  0x9a   : > { %682 = vmatpush.msra.mxu0 %v261_v2  ;;  %710 = vmatpush.msra.mxu1 %v363_v3 }
  0x9b   : > { %743 = vmatpush.msra.mxu2 %v244_v4  ;;  %771 = vmatpush.msra.mxu3 %v346_v5 }
  0x9c   : > { %580 = vmatmul.f32.gmra.mxu0 %v1344_v46  ;;  %711 = vmatpush.msra.mxu1 %v357_v7 }
  0x9d   : > { %683 = vmatpush.msra.mxu0 %v255_v6  ;;  %744 = vmatpush.msra.mxu2 %v238_v8 }
  0x9e   : > { %772 = vmatpush.msra.mxu3 %v340_v9  ;;  %609 = vmatmul.f32.gmra.mxu1 %v1349_v51 }
  0x9f   : > { %684 = vmatpush.msra.mxu0 %v249_v10  ;;  %712 = vmatpush.msra.mxu1 %v351_v12 }
  0xa0   : > { %745 = vmatmul.f32.vlgmr.msra.gmra.mxu2 %v1315_v61  ;;  %773 = vmatpush.msra.mxu3 %v334_v13 }
  0xa1   : > { %685 = vmatpush.msra.mxu0 %v243_v14  ;;  %713 = vmatpush.msra.mxu1 %v345_v16 }
  0xa2   : > { %774 = vmatmul.f32.vlgmr.msra.gmra.mxu3 %v1318_v62 }
  0xa3   : > { %686 = vmatpush.msra.mxu0 %v237_v17  ;;  %714 = vmatpush.msra.mxu1 %v339_v18 }
  0xa4   : > { %687 = vmatmul.f32.vlgmr.msra.gmra.mxu0 %v1315_v61  ;;  %v1386_v61 = vld [vmem:[#allocation7] sm:$0x3f] }
  0xa5   : > { %715 = vmatpush.msra.mxu1 %v333_v19  ;;  %v429_v50 = vperm.slane %v1386_v61, 2  ;;  %v430_v52 = vperm.slane %v1386_v61, 3 }
  0xa6   : > { %716 = vmatmul.f32.vlgmr.msra.gmra.mxu1 %v1318_v62  ;;  %v427_v62 = vperm.slane %v1386_v61, 0 }
  0xa8   : > { %748 = vmatmul.f32.gmra.mxu2 %v1324_v11 }
  0xaa   : > { %777 = vmatmul.f32.gmra.mxu3 %v1328_v15 }
  0xac   : > { %690 = vmatmul.f32.gmra.mxu0 %v1324_v11  ;;  %v428_v11 = vperm.slane %v1386_v61, 1 }
  0xae   : > { %719 = vmatmul.f32.gmra.mxu1 %v1328_v15 }
  0xb0   : > { %751 = vmatmul.f32.gmra.mxu2 %v1334_v28 }
  0xb2   : > { %780 = vmatmul.f32.gmra.mxu3 %v1339_v33 }
  0xb4   : > { %693 = vmatmul.f32.gmra.mxu0 %v1334_v28 }
  0xb6   : > { %722 = vmatmul.f32.gmra.mxu1 %v1339_v33 }
  0xb8   : > { %754 = vmatmul.f32.gmra.mxu2 %v1344_v46 }
  0xba   : > { %783 = vmatmul.f32.gmra.mxu3 %v1349_v51 }
  0xbc   : > { %696 = vmatmul.f32.gmra.mxu0 %v1344_v46 }
  0xbe   : > { %725 = vmatmul.f32.gmra.mxu1 %v1349_v51 }
  0xd2   : > { %v456_v15 = vpop.f32.mrf.mxu0 }
  0xd3   : > { %v457_v20 = vadd.f32 %v456_v15, %v427_v62 }
  0xd4   : > { %v514_v28 = vpop.f32.mrf.mxu2 }
  0xd5   : > { %v485_v21 = vpop.f32.mrf.mxu1  ;;  %v515_v33 = vadd.f32 %v514_v28, %v428_v11  ;;  %v543_v23 = vpop.f32.mrf.mxu3 }
  0xd6   : > { %v486_v22 = vadd.f32 %v485_v21, %v457_v20  ;;  %v431_v21 = vperm.slane %v1386_v61, 4 }
  0xd7   : > { %v544_v46 = vadd.f32 %v543_v23, %v515_v33  ;;  %v432_v33 = vperm.slane %v1386_v61, 5 }
  0xd8   : > { %787 = vst [vmem:[%s1391_s23] sm:$0xff] %v486_v22 }
  0xd9   : > { %788 = vst [vmem:[%s1391_s23 + $0x8] sm:$0xff] %v544_v46 }
  0xdc   : > { %v517_v24 = vpop.f32.mrf.mxu2 }
  0xdd   : > { %v459_v51 = vpop.f32.mrf.mxu0  ;;  %v518_v26 = vadd.f32 %v517_v24, %v428_v11 }
  0xde   : > { %v460_v25 = vadd.f32 %v459_v51, %v427_v62 }
  0xdf   : > { %v546_v27 = vpop.f32.mrf.mxu3  ;;  %v488_v29 = vpop.f32.mrf.mxu1 }
  0xe0   : > { %v547_v30 = vadd.f32 %v546_v27, %v518_v26  ;;  %v489_v31 = vadd.f32 %v488_v29, %v460_v25 }
  0xe2   : > { %794 = vst [vmem:[%s1391_s23 + $0x38] sm:$0xff] %v547_v30 }
  0xe3   : > { %793 = vst [vmem:[%s1391_s23 + $0x30] sm:$0xff] %v489_v31 }
  0xe6   : > { %v520_v32 = vpop.f32.mrf.mxu2 }
  0xe7   : > { %v462_v34 = vpop.f32.mrf.mxu0  ;;  %v521_v35 = vadd.f32 %v520_v32, %v428_v11 }
  0xe8   : > { %v463_v36 = vadd.f32 %v462_v34, %v427_v62 }
  0xe9   : > { %v549_v37 = vpop.f32.mrf.mxu3  ;;  %v491_v38 = vpop.f32.mrf.mxu1 }
  0xea   : > { %v550_v39 = vadd.f32 %v549_v37, %v521_v35  ;;  %v492_v40 = vadd.f32 %v491_v38, %v463_v36 }
  0xec   : > { %800 = vst [vmem:[%s1391_s23 + $0x68] sm:$0xff] %v550_v39 }
  0xed   : > { %799 = vst [vmem:[%s1391_s23 + $0x60] sm:$0xff] %v492_v40 }
  0xf0   : > { %v523_v41 = vpop.f32.mrf.mxu2 }
  0xf1   : > { %v465_v42 = vpop.f32.mrf.mxu0  ;;  %v524_v43 = vadd.f32 %v523_v41, %v428_v11 }
  0xf2   : > { %v466_v44 = vadd.f32 %v465_v42, %v427_v62 }
  0xf3   : > { %v552_v45 = vpop.f32.mrf.mxu3  ;;  %v494_v47 = vpop.f32.mrf.mxu1 }
  0xf4   : > { %v553_v48 = vadd.f32 %v552_v45, %v524_v43  ;;  %v495_v49 = vadd.f32 %v494_v47, %v466_v44 }
  0xf6   : > { %806 = vst [vmem:[%s1391_s23 + $0x98] sm:$0xff] %v553_v48 }
  0xf7   : > { %805 = vst [vmem:[%s1391_s23 + $0x90] sm:$0xff] %v495_v49 }
  0xfb   : > { %v572_v53 = vpop.f32.mrf.mxu0  ;;  %v630_v54 = vpop.f32.mrf.mxu2 }
  0xfc   : > { %v573_v55 = vadd.f32 %v572_v53, %v429_v50  ;;  %v631_v56 = vadd.f32 %v630_v54, %v430_v52 }
  0xfd   : > { %v601_v57 = vpop.f32.mrf.mxu1  ;;  %v659_v58 = vpop.f32.mrf.mxu3 }
  0xfe   : > { %v602_v59 = vadd.f32 %v601_v57, %v573_v55  ;;  %v660_v60 = vadd.f32 %v659_v58, %v631_v56 }
 0x100   : > { %789 = vst [vmem:[%s1391_s23 + $0x10] sm:$0xff] %v602_v59 }
 0x101   : > { %790 = vst [vmem:[%s1391_s23 + $0x18] sm:$0xff] %v660_v60 }
 0x104   : > { %v633_v63 = vpop.f32.mrf.mxu2 }
 0x105   : > { %v575_v0 = vpop.f32.mrf.mxu0  ;;  %v634_v1 = vadd.f32 %v633_v63, %v430_v52 }
 0x106   : > { %v576_v2 = vadd.f32 %v575_v0, %v429_v50 }
 0x107   : > { %v662_v3 = vpop.f32.mrf.mxu3  ;;  %v604_v4 = vpop.f32.mrf.mxu1 }
 0x108   : > { %v663_v5 = vadd.f32 %v662_v3, %v634_v1  ;;  %v605_v6 = vadd.f32 %v604_v4, %v576_v2 }
 0x10a   : > { %796 = vst [vmem:[%s1391_s23 + $0x48] sm:$0xff] %v663_v5 }
 0x10b   : > { %795 = vst [vmem:[%s1391_s23 + $0x40] sm:$0xff] %v605_v6 }
 0x10e   : > { %v636_v7 = vpop.f32.mrf.mxu2 }
 0x10f   : > { %v578_v8 = vpop.f32.mrf.mxu0  ;;  %v637_v9 = vadd.f32 %v636_v7, %v430_v52 }
 0x110   : > { %v579_v10 = vadd.f32 %v578_v8, %v429_v50 }
 0x111   : > { %v665_v12 = vpop.f32.mrf.mxu3  ;;  %v607_v13 = vpop.f32.mrf.mxu1 }
 0x112   : > { %v666_v14 = vadd.f32 %v665_v12, %v637_v9  ;;  %v608_v16 = vadd.f32 %v607_v13, %v579_v10 }
 0x114   : > { %802 = vst [vmem:[%s1391_s23 + $0x78] sm:$0xff] %v666_v14 }
 0x115   : > { %801 = vst [vmem:[%s1391_s23 + $0x70] sm:$0xff] %v608_v16 }
 0x118   : > { %v639_v17 = vpop.f32.mrf.mxu2 }
 0x119   : > { %v581_v18 = vpop.f32.mrf.mxu0  ;;  %v640_v19 = vadd.f32 %v639_v17, %v430_v52 }
 0x11a   : > { %v582_v62 = vadd.f32 %v581_v18, %v429_v50 }
 0x11b   : > { %v668_v11 = vpop.f32.mrf.mxu3  ;;  %v610_v15 = vpop.f32.mrf.mxu1 }
 0x11c   : > { %v669_v20 = vadd.f32 %v668_v11, %v640_v19  ;;  %v611_v28 = vadd.f32 %v610_v15, %v582_v62 }
 0x11e   : > { %808 = vst [vmem:[%s1391_s23 + $0xa8] sm:$0xff] %v669_v20 }
 0x11f   : > { %807 = vst [vmem:[%s1391_s23 + $0xa0] sm:$0xff] %v611_v28 }
 0x121   : > { %v688_v22 = vpop.f32.mrf.mxu0 }
 0x122   : > { %v689_v23 = vadd.f32 %v688_v22, %v431_v21 }
 0x123   : > { %v746_v46 = vpop.f32.mrf.mxu2  ;;  %v717_v24 = vpop.f32.mrf.mxu1 }
 0x124   : > { %v747_v51 = vadd.f32 %v746_v46, %v432_v33  ;;  %v718_v25 = vadd.f32 %v717_v24, %v689_v23 }
 0x125   : > { %v775_v26 = vpop.f32.mrf.mxu3 }
 0x126   : > { %v776_v27 = vadd.f32 %v775_v26, %v747_v51  ;;  %791 = vst [vmem:[%s1391_s23 + $0x20] sm:$0xff] %v718_v25 }
 0x128   : > { %792 = vst [vmem:[%s1391_s23 + $0x28] sm:$0xff] %v776_v27 }
 0x129   : > { %v691_v29 = vpop.f32.mrf.mxu0 }
 0x12a   : > { %v692_v30 = vadd.f32 %v691_v29, %v431_v21 }
 0x12b   : > { %v749_v31 = vpop.f32.mrf.mxu2  ;;  %v720_v34 = vpop.f32.mrf.mxu1 }
 0x12c   : > { %v750_v32 = vadd.f32 %v749_v31, %v432_v33  ;;  %v721_v61 = vadd.f32 %v720_v34, %v692_v30 }
 0x12d   : > { %v778_v35 = vpop.f32.mrf.mxu3 }
 0x12e   : > { %v779_v36 = vadd.f32 %v778_v35, %v750_v32  ;;  %797 = vst [vmem:[%s1391_s23 + $0x50] sm:$0xff] %v721_v61 }
 0x130   : > { %798 = vst [vmem:[%s1391_s23 + $0x58] sm:$0xff] %v779_v36 }
 0x131   : > { %v694_v37 = vpop.f32.mrf.mxu0 }
 0x132   : > { %v695_v38 = vadd.f32 %v694_v37, %v431_v21 }
 0x133   : > { %v752_v39 = vpop.f32.mrf.mxu2  ;;  %v723_v41 = vpop.f32.mrf.mxu1 }
 0x134   : > { %v753_v40 = vadd.f32 %v752_v39, %v432_v33  ;;  %v724_v42 = vadd.f32 %v723_v41, %v695_v38 }
 0x135   : > { %v781_v43 = vpop.f32.mrf.mxu3 }
 0x136   : > { %v782_v44 = vadd.f32 %v781_v43, %v753_v40  ;;  %803 = vst [vmem:[%s1391_s23 + $0x80] sm:$0xff] %v724_v42 }
 0x138   : > { %804 = vst [vmem:[%s1391_s23 + $0x88] sm:$0xff] %v782_v44 }
 0x139   : > { %v697_v45 = vpop.f32.mrf.mxu0 }
 0x13a   : > { %v698_v47 = vadd.f32 %v697_v45, %v431_v21 }
 0x13b   : > { %v755_v48 = vpop.f32.mrf.mxu2  ;;  %v726_v50 = vpop.f32.mrf.mxu1 }
 0x13c   : > { %v756_v49 = vadd.f32 %v755_v48, %v432_v33  ;;  %v727_v52 = vadd.f32 %v726_v50, %v698_v47 }
 0x13d   : > { %v784_v53 = vpop.f32.mrf.mxu3 }
 0x13e   : > { %v785_v54 = vadd.f32 %v784_v53, %v756_v49  ;;  %809 = vst [vmem:[%s1391_s23 + $0xb0] sm:$0xff] %v727_v52 }
 0x140   : > { %810 = vst [vmem:[%s1391_s23 + $0xb8] sm:$0xff] %v785_v54 }
 0x141   : > { %1132 = shalt.err (!%p1129_p10)
}
 0x142   : > { %s1183_s22 = smov 768   ;;  %s1184_s25 = smov 48  }
 0x143   : > { %952 = dma.vmem_to_hbm [thread:$0]  (%p1270_p0), %s826_s4, 3072, %s828_s5, %s812_s16, %s1183_s22, %s1183_s22, %s1184_s25  }
 0x144 PF: > { %p974_p11 = scmp.ge.s32.totalorder %s1175_s15, 2  ;;  %s842_s30 = sand.u32 1, %s1163_s12  }
 0x145   : > { %s843_s18 = scalar_lea.sflag [#allocation4], %s842_s30 }
 0x146   : > { %p966_p12 = pnand %p974_p11, %p1240_p6 }
 0x148   : > { %p967_p13 = pneg %p966_p12 }
 0x14a   : > { %1158 = dma.done.wait (%p967_p13), %s843_s18, 3072  }
 0x14b   : > { %1160 = vsyncadd (%p967_p13), %s843_s18, 4294964224  ;;  %p17_p3 = scmp.ge.s32.totalorder %s1260_s6, 5   ;;  %s1463_s12 = smov %s1167_s13 }
 0x14c   : > { %s1464_s13 = smov %s1171_s14  ;;  %s1465_s14 = smov %s1276_s10 }
 0x14d   : > { %s1466_s15 = smov %s1260_s6  ;;  %19 = sbr.rel (!%p17_p3) target bundleno = 6 (0x6), region = 85 }
 0x152   :  { %849 = vsyncpa [#allocation3], 1 }
 0x153   :  { %851 = vsyncpa [#allocation3 + $0x1], 1 }
 0x154   :  { %852 = vsyncpa [#allocation6], 1 }
 0x155   :  { %853 = vsyncpa [#allocation4], 1 }
 0x156   :  { %855 = vsyncpa [#allocation4 + $0x1], 1 }

</bundles_post_ra>
